<compile_context>
chip_gen: v6e
topology: v6e:2x2x1
jax: 0.10.0
libtpu: 0.0.40
codegen_flags: <defaults>
</compile_context>

<pallas_src>
import functools

import jax
import jax.numpy as jnp
from jax import lax
from jax.experimental import pallas as pl
from jax.experimental.pallas import tpu as pltpu


def cnn_block_kernel(x_ref, w_ref, b_ref, o_ref, xpad_ref, *,
                     H, H_conv, KH, ph, pool_h, neg_slope):
    # x_ref    : (H, W*C_in)                 bf16  unpadded activations (1 image)
    # w_ref    : (KH, W*C_in, W_conv*C_out)  bf16  banded conv weights
    # b_ref    : (1, W_conv*C_out)           f32   lane-tiled bias
    # o_ref    : (H_out, W_conv*C_out)       f32   lane-dense pooled output
    # xpad_ref : (H + 2*ph, W*C_in)          bf16  VMEM scratch (H padding)
    WC_in = x_ref.shape[1]
    WC_out = o_ref.shape[1]
    H_out = o_ref.shape[0]

    # --- zero-pad along H inside VMEM (no padded HBM round trip) -------------
    if ph:
        xpad_ref[pl.ds(0, ph), :] = jnp.zeros((ph, WC_in), xpad_ref.dtype)
        xpad_ref[pl.ds(ph + H, ph), :] = jnp.zeros((ph, WC_in), xpad_ref.dtype)
    xpad_ref[pl.ds(ph, H), :] = x_ref[...]

    # --- conv: KH matmuls on the MXU, bias folded into the accumulator -------
    acc = jnp.broadcast_to(b_ref[...], (H_conv, WC_out)).astype(jnp.float32)
    for kh in range(KH):                      # static unroll, KH = 5
        lhs = xpad_ref[pl.ds(kh, H_conv), :]  # (H_conv, W*C_in) bf16
        acc = acc + jnp.dot(lhs, w_ref[kh],
                            preferred_element_type=jnp.float32)

    # --- LeakyReLU on the f32 accumulator (VPU) -------------------------------
    y = jnp.where(acc >= 0, acc, neg_slope * acc)

    # --- MaxPool2d((pool_h, 1)) along H, floor mode (drop trailing rows) ------
    y = y[:H_out * pool_h].reshape(H_out, pool_h, WC_out)
    pooled = y[:, 0]
    for p in range(1, pool_h):
        pooled = jnp.maximum(pooled, y[:, p])

    o_ref[...] = pooled.astype(o_ref.dtype)


def _banded_weights(w_hwio, W, W_conv, pw):
    """B[kh, w_in*C_in+ci, w_out*C_out+co] = w[kh, w_in-w_out+pw, ci, co] (0 outside).

    Folds the KW taps and the W-direction zero padding into one
    (W*C_in, W_conv*C_out) banded matrix per kh, so the conv becomes KH dense
    matmuls with a lane-dense (W_conv*C_out) output axis.
    """
    KH, KW, C_in, C_out = w_hwio.shape
    w_in = jnp.arange(W)[:, None]              # unpadded input column
    w_out = jnp.arange(W_conv)[None, :]        # output column
    kw = w_in - w_out + pw                     # (W, W_conv)
    valid = ((kw >= 0) & (kw < KW)).astype(w_hwio.dtype)
    kw_c = jnp.clip(kw, 0, KW - 1)
    b = w_hwio[:, kw_c, :, :] * valid[None, :, :, None, None]  # (KH,W,W_conv,C_in,C_out)
    b = jnp.transpose(b, (0, 1, 3, 2, 4))                      # (KH,W,C_in,W_conv,C_out)
    return b.reshape(KH, W * C_in, W_conv * C_out)


def cnn_block(x_nchw, w_hwio, bias, *, padding=(2, 1), pool_h=2,
              negative_slope=0.01):
    """x_nchw: (N, C_in, H, W); w_hwio: (KH, KW, C_in, C_out); bias: (C_out,)."""
    N, C_in, H, W = x_nchw.shape
    KH, KW, _, C_out = w_hwio.shape
    ph, pw = padding
    H_conv = H + 2 * ph - KH + 1          # == H for k=5, pad=2
    W_conv = W + 2 * pw - KW + 1          # == W for k=3, pad=1
    H_out = H_conv // pool_h              # MaxPool2d floor mode
    H_pad = H + 2 * ph
    WC_in = W * C_in
    WC_out = W_conv * C_out               # = 128 here -> lane-dense output

    # Wrapper-side glue (XLA): NCHW -> (N, H, W*C_in) bf16; banded bf16 weights.
    x = jnp.transpose(x_nchw, (0, 2, 3, 1)).reshape(N, H, WC_in)
    x = x.astype(jnp.bfloat16)
    w_band = _banded_weights(w_hwio.astype(jnp.float32), W, W_conv, pw)
    w_band = w_band.astype(jnp.bfloat16)
    b_tile = jnp.tile(bias.astype(jnp.float32), W_conv).reshape(1, WC_out)

    kernel = functools.partial(
        cnn_block_kernel, H=H, H_conv=H_conv, KH=KH, ph=ph,
        pool_h=pool_h, neg_slope=negative_slope)

    out_flat = pl.pallas_call(
        kernel,
        out_shape=jax.ShapeDtypeStruct((N, H_out, WC_out), jnp.float32),
        grid=(N,),
        in_specs=[
            pl.BlockSpec((None, H, WC_in), lambda n: (n, 0, 0)),
            pl.BlockSpec((KH, WC_in, WC_out), lambda n: (0, 0, 0)),
            pl.BlockSpec((1, WC_out), lambda n: (0, 0)),
        ],
        out_specs=pl.BlockSpec((None, H_out, WC_out), lambda n: (n, 0, 0)),
        scratch_shapes=[pltpu.VMEM((H_pad, WC_in), jnp.bfloat16)],
        compiler_params=pltpu.CompilerParams(
            dimension_semantics=("parallel",)),
    )(x, w_band, b_tile)

    # (N, H_out, W_conv*C_out) -> PyTorch NCHW convention.
    out = out_flat.reshape(N, H_out, W_conv, C_out)
    return jnp.transpose(out, (0, 3, 1, 2))


def reference(x_nchw, w_hwio, bias, *, negative_slope=0.01):
    """Pure-JAX reference mirroring the PyTorch module."""
    w_oihw = jnp.transpose(w_hwio, (3, 2, 0, 1))
    y = lax.conv_general_dilated(
        x_nchw.astype(jnp.float32), w_oihw.astype(jnp.float32),
        window_strides=(1, 1), padding=((2, 2), (1, 1)),
        dimension_numbers=("NCHW", "OIHW", "NCHW"))
    y = y + bias.reshape(1, -1, 1, 1)
    y = jnp.where(y >= 0, y, negative_slope * y)
    y = lax.reduce_window(y, -jnp.inf, lax.max,
                          (1, 1, 2, 1), (1, 1, 2, 1), "VALID")
    return y


if __name__ == "__main__":
    key = jax.random.PRNGKey(0)
    k_x, k_w, k_b = jax.random.split(key, 3)

    N, C_in, C_out, H, W = 2, 4, 8, 16, 16
    KH, KW = 5, 3

    x = jax.random.normal(k_x, (N, C_in, H, W), dtype=jnp.float32)

    # Deterministic parameter init (PyTorch-like uniform bound 1/sqrt(fan_in)).
    fan_in = C_in * KH * KW
    bound = 1.0 / (fan_in ** 0.5)
    w = jax.random.uniform(k_w, (KH, KW, C_in, C_out), jnp.float32,
                           minval=-bound, maxval=bound)
    b = jax.random.uniform(k_b, (C_out,), jnp.float32,
                           minval=-bound, maxval=bound)

    out = jax.block_until_ready(cnn_block(x, w, b))

    # Reference with the same bf16 input/weight quantization the kernel uses
    # (f32 accumulation in both) -> tight tolerance.
    xq = x.astype(jnp.bfloat16).astype(jnp.float32)
    wq = w.astype(jnp.bfloat16).astype(jnp.float32)
    ref_q = jax.block_until_ready(reference(xq, wq, b))
    # Full-f32 reference -> loose tolerance bounding the bf16 cast error.
    ref_f = jax.block_until_ready(reference(x, w, b))

    assert out.shape == (N, C_out, H // 2, W), out.shape
    assert jnp.allclose(out, ref_q, rtol=1e-3, atol=1e-3), \
        float(jnp.max(jnp.abs(out - ref_q)))
    assert jnp.allclose(out, ref_f, rtol=5e-2, atol=5e-2), \
        float(jnp.max(jnp.abs(out - ref_f)))

    print("KERNEL_OK")
</pallas_src>

<mosaic_0001>
module attributes {stable_mosaic.version = 11 : i64} {
  func.func @cnn_block_kernel(%arg0: i32, %arg1: memref<1x16x64xbf16, #tpu.memory_space<vmem>>, %arg2: memref<5x64x128xbf16, #tpu.memory_space<vmem>>, %arg3: memref<1x128xf32, #tpu.memory_space<vmem>>, %arg4: memref<1x8x128xf32, #tpu.memory_space<vmem>>, %arg5: memref<20x64xbf16, #tpu.memory_space<vmem>>) attributes {dimension_semantics = [#tpu.dimension_semantics<parallel>], iteration_bounds = array<i64: 2>, scalar_prefetch = 0 : i64, scratch_operands = 1 : i64, tpu.core_type = #tpu.core_type<tc>, window_params = [{transform_indices = @transform_0, window_bounds = array<i64: 1, 16, 64>}, {pipeline_mode = #tpu.pipeline_mode<synchronous>, transform_indices = @transform_1, window_bounds = array<i64: 5, 64, 128>}, {pipeline_mode = #tpu.pipeline_mode<synchronous>, transform_indices = @transform_2, window_bounds = array<i64: 1, 128>}, {transform_indices = @transform_3, window_bounds = array<i64: 1, 8, 128>}]} {
    %cst = arith.constant 0.000000e+00 : bf16
    %0 = vector.broadcast %cst : bf16 to vector<2x64xbf16>
    %c0 = arith.constant 0 : index
    %c0_0 = arith.constant 0 : index
    %1 = vector.load %arg5[%c0, %c0_0] : memref<20x64xbf16, #tpu.memory_space<vmem>>, vector<2x64xbf16>
    tpu.vector_store %arg5[%c0, %c0_0], %0 {strides = array<i32>} : memref<20x64xbf16, #tpu.memory_space<vmem>>, vector<2x64xbf16>,
    %cst_1 = arith.constant 0.000000e+00 : bf16
    %2 = vector.broadcast %cst_1 : bf16 to vector<2x64xbf16>
    %c18 = arith.constant 18 : index
    %c0_2 = arith.constant 0 : index
    %3 = vector.load %arg5[%c18, %c0_2] : memref<20x64xbf16, #tpu.memory_space<vmem>>, vector<2x64xbf16>
    tpu.vector_store %arg5[%c18, %c0_2], %2 {strides = array<i32>} : memref<20x64xbf16, #tpu.memory_space<vmem>>, vector<2x64xbf16>,
    %c0_3 = arith.constant 0 : index
    %c0_4 = arith.constant 0 : index
    %c0_5 = arith.constant 0 : index
    %4 = vector.load %arg1[%c0_3, %c0_4, %c0_5] : memref<1x16x64xbf16, #tpu.memory_space<vmem>>, vector<1x16x64xbf16>
    %5 = vector.shape_cast %4 : vector<1x16x64xbf16> to vector<16x64xbf16>
    %c2 = arith.constant 2 : index
    %c0_6 = arith.constant 0 : index
    %6 = vector.load %arg5[%c2, %c0_6] : memref<20x64xbf16, #tpu.memory_space<vmem>>, vector<16x64xbf16>
    tpu.vector_store %arg5[%c2, %c0_6], %5 {strides = array<i32>} : memref<20x64xbf16, #tpu.memory_space<vmem>>, vector<16x64xbf16>,
    %c0_7 = arith.constant 0 : index
    %c0_8 = arith.constant 0 : index
    %7 = vector.load %arg3[%c0_7, %c0_8] : memref<1x128xf32, #tpu.memory_space<vmem>>, vector<1x128xf32>
    %8 = vector.shape_cast %7 : vector<1x128xf32> to vector<1x128xf32>
    %9 = vector.broadcast %8 : vector<1x128xf32> to vector<16x128xf32>
    %c0_9 = arith.constant 0 : index
    %c0_10 = arith.constant 0 : index
    %10 = vector.load %arg5[%c0_9, %c0_10] : memref<20x64xbf16, #tpu.memory_space<vmem>>, vector<16x64xbf16>
    %c0_11 = arith.constant 0 : index
    %c0_12 = arith.constant 0 : index
    %c0_13 = arith.constant 0 : index
    %11 = vector.load %arg2[%c0_11, %c0_12, %c0_13] : memref<5x64x128xbf16, #tpu.memory_space<vmem>>, vector<1x64x128xbf16>
    %12 = vector.shape_cast %11 : vector<1x64x128xbf16> to vector<64x128xbf16>
    %cst_14 = arith.constant dense<0.000000e+00> : vector<16x128xf32>
    %13 = tpu.matmul %10, %12, %cst_14 {dimension_numbers = #tpu.dot_dimension_numbers<[1], [0], [0], [1], [0, 0, 1, 1], [], []>} : vector<16x64xbf16>, vector<64x128xbf16>, vector<16x128xf32> -> vector<16x128xf32>
    %14 = arith.addf %9, %13 : vector<16x128xf32>
    %c1 = arith.constant 1 : index
    %c0_15 = arith.constant 0 : index
    %15 = vector.load %arg5[%c1, %c0_15] : memref<20x64xbf16, #tpu.memory_space<vmem>>, vector<16x64xbf16>
    %c1_16 = arith.constant 1 : index
    %c0_17 = arith.constant 0 : index
    %c0_18 = arith.constant 0 : index
    %16 = vector.load %arg2[%c1_16, %c0_17, %c0_18] : memref<5x64x128xbf16, #tpu.memory_space<vmem>>, vector<1x64x128xbf16>
    %17 = vector.shape_cast %16 : vector<1x64x128xbf16> to vector<64x128xbf16>
    %cst_19 = arith.constant dense<0.000000e+00> : vector<16x128xf32>
    %18 = tpu.matmul %15, %17, %cst_19 {dimension_numbers = #tpu.dot_dimension_numbers<[1], [0], [0], [1], [0, 0, 1, 1], [], []>} : vector<16x64xbf16>, vector<64x128xbf16>, vector<16x128xf32> -> vector<16x128xf32>
    %19 = arith.addf %14, %18 : vector<16x128xf32>
    %c2_20 = arith.constant 2 : index
    %c0_21 = arith.constant 0 : index
    %20 = vector.load %arg5[%c2_20, %c0_21] : memref<20x64xbf16, #tpu.memory_space<vmem>>, vector<16x64xbf16>
    %c2_22 = arith.constant 2 : index
    %c0_23 = arith.constant 0 : index
    %c0_24 = arith.constant 0 : index
    %21 = vector.load %arg2[%c2_22, %c0_23, %c0_24] : memref<5x64x128xbf16, #tpu.memory_space<vmem>>, vector<1x64x128xbf16>
    %22 = vector.shape_cast %21 : vector<1x64x128xbf16> to vector<64x128xbf16>
    %cst_25 = arith.constant dense<0.000000e+00> : vector<16x128xf32>
    %23 = tpu.matmul %20, %22, %cst_25 {dimension_numbers = #tpu.dot_dimension_numbers<[1], [0], [0], [1], [0, 0, 1, 1], [], []>} : vector<16x64xbf16>, vector<64x128xbf16>, vector<16x128xf32> -> vector<16x128xf32>
    %24 = arith.addf %19, %23 : vector<16x128xf32>
    %c3 = arith.constant 3 : index
    %c0_26 = arith.constant 0 : index
    %25 = vector.load %arg5[%c3, %c0_26] : memref<20x64xbf16, #tpu.memory_space<vmem>>, vector<16x64xbf16>
    %c3_27 = arith.constant 3 : index
    %c0_28 = arith.constant 0 : index
    %c0_29 = arith.constant 0 : index
    %26 = vector.load %arg2[%c3_27, %c0_28, %c0_29] : memref<5x64x128xbf16, #tpu.memory_space<vmem>>, vector<1x64x128xbf16>
    %27 = vector.shape_cast %26 : vector<1x64x128xbf16> to vector<64x128xbf16>
    %cst_30 = arith.constant dense<0.000000e+00> : vector<16x128xf32>
    %28 = tpu.matmul %25, %27, %cst_30 {dimension_numbers = #tpu.dot_dimension_numbers<[1], [0], [0], [1], [0, 0, 1, 1], [], []>} : vector<16x64xbf16>, vector<64x128xbf16>, vector<16x128xf32> -> vector<16x128xf32>
    %29 = arith.addf %24, %28 : vector<16x128xf32>
    %c4 = arith.constant 4 : index
    %c0_31 = arith.constant 0 : index
    %30 = vector.load %arg5[%c4, %c0_31] : memref<20x64xbf16, #tpu.memory_space<vmem>>, vector<16x64xbf16>
    %c4_32 = arith.constant 4 : index
    %c0_33 = arith.constant 0 : index
    %c0_34 = arith.constant 0 : index
    %31 = vector.load %arg2[%c4_32, %c0_33, %c0_34] : memref<5x64x128xbf16, #tpu.memory_space<vmem>>, vector<1x64x128xbf16>
    %32 = vector.shape_cast %31 : vector<1x64x128xbf16> to vector<64x128xbf16>
    %cst_35 = arith.constant dense<0.000000e+00> : vector<16x128xf32>
    %33 = tpu.matmul %30, %32, %cst_35 {dimension_numbers = #tpu.dot_dimension_numbers<[1], [0], [0], [1], [0, 0, 1, 1], [], []>} : vector<16x64xbf16>, vector<64x128xbf16>, vector<16x128xf32> -> vector<16x128xf32>
    %34 = arith.addf %29, %33 : vector<16x128xf32>
    %cst_36 = arith.constant 0.000000e+00 : f32
    %35 = vector.broadcast %cst_36 : f32 to vector<16x128xf32>
    %36 = arith.cmpf oge, %34, %35 : vector<16x128xf32>
    %cst_37 = arith.constant 0.00999999977 : f32
    %37 = vector.broadcast %cst_37 : f32 to vector<16x128xf32>
    %38 = arith.mulf %37, %34 : vector<16x128xf32>
    %39 = arith.select %36, %34, %38 : vector<16x128xi1>, vector<16x128xf32>
    %40 = vector.shape_cast %39 : vector<16x128xf32> to vector<8x2x128xf32>
    %41 = vector.extract_strided_slice %40 {offsets = [0, 0, 0], sizes = [8, 1, 128], strides = [1, 1, 1]} : vector<8x2x128xf32> to vector<8x1x128xf32>
    %42 = vector.shape_cast %41 : vector<8x1x128xf32> to vector<8x128xf32>
    %43 = vector.extract_strided_slice %40 {offsets = [0, 1, 0], sizes = [8, 1, 128], strides = [1, 1, 1]} : vector<8x2x128xf32> to vector<8x1x128xf32>
    %44 = vector.shape_cast %43 : vector<8x1x128xf32> to vector<8x128xf32>
    %45 = arith.maximumf %42, %44 : vector<8x128xf32>
    %c0_38 = arith.constant 0 : index
    %c0_39 = arith.constant 0 : index
    %c0_40 = arith.constant 0 : index
    %46 = vector.load %arg4[%c0_38, %c0_39, %c0_40] : memref<1x8x128xf32, #tpu.memory_space<vmem>>, vector<1x8x128xf32>
    %47 = vector.shape_cast %46 : vector<1x8x128xf32> to vector<8x128xf32>
    %48 = vector.shape_cast %45 : vector<8x128xf32> to vector<1x8x128xf32>
    tpu.vector_store %arg4[%c0_38, %c0_39, %c0_40], %48 {strides = array<i32>} : memref<1x8x128xf32, #tpu.memory_space<vmem>>, vector<1x8x128xf32>,
    return
  }
  func.func @transform_0(%arg0: i32) -> (i32, i32, i32) {
    %c0_i32 = arith.constant 0 : i32
    %c0_i32_0 = arith.constant 0 : i32
    %c0_i32_1 = arith.constant 0 : i32
    return %arg0, %c0_i32, %c0_i32_0 : i32, i32, i32
  }
  func.func @transform_1(%arg0: i32) -> (i32, i32, i32) {
    %c0_i32 = arith.constant 0 : i32
    %c0_i32_0 = arith.constant 0 : i32
    %c0_i32_1 = arith.constant 0 : i32
    %c0_i32_2 = arith.constant 0 : i32
    return %c0_i32, %c0_i32_0, %c0_i32_1 : i32, i32, i32
  }
  func.func @transform_2(%arg0: i32) -> (i32, i32) {
    %c0_i32 = arith.constant 0 : i32
    %c0_i32_0 = arith.constant 0 : i32
    %c0_i32_1 = arith.constant 0 : i32
    return %c0_i32, %c0_i32_0 : i32, i32
  }
  func.func @transform_3(%arg0: i32) -> (i32, i32, i32) {
    %c0_i32 = arith.constant 0 : i32
    %c0_i32_0 = arith.constant 0 : i32
    %c0_i32_1 = arith.constant 0 : i32
    return %arg0, %c0_i32, %c0_i32_0 : i32, i32, i32
  }
}

</mosaic_0001>

<bundles_post_ra>
// kernel: tpu_custom_call.1
= control target key start
LH: loop header
LB: loop body
LE: loop exit
PB: predicated region body
PF: predicated region fallthrough
CT: control target
= control target key end

     0   :  { %8 = vsyncpa [#allocation4], 0  ;;  %s1543_s0 = inlined_call_operand.hbm [shape: bf16[2,16,64], index: 0, kind: input, shape index: {}]   ;;  %s1544_s1 = inlined_call_operand.hbm [shape: bf16[5,64,128], index: 1, kind: input, shape index: {}]   ;;  %s1545_s2 = inlined_call_operand.vmem [shape: f32[1,128], index: 2, kind: input, shape index: {}]   ;;  %s1546_s3 = inlined_call_operand.hbm [shape: f32[2,8,128], index: 3, kind: output, shape index: {}]  }
   0x1   :  { %10 = vsyncpa [#allocation4 + $0x1], 0 }
   0x2   :  { %11 = vsyncpa [#allocation7], 0 }
   0x3   :  { %12 = vsyncpa [#allocation5], 0 }
   0x4   :  { %14 = vsyncpa [#allocation5 + $0x1], 0  ;;  %s1315_s12 = smov 0   ;;  %s1317_s13 = smov 0  }
   0x5   :  { %s1319_s14 = smov 0   ;;  %s1321_s15 = smov 0  }
   0x6 LB: > { %s1336_s16 = sadd.s32 4294967295, %s1284_s15   ;;  %s932_s17 = sadd.s32 4294967294, %s1284_s15   ;;  %s1284_s15 = sphi %s1321_s15, %s1568_s15   ;;  %s1280_s14 = sphi %s1319_s14, %s1567_s14   ;;  %s1276_s13 = sphi %s1317_s13, %s1566_s13   ;;  %s1272_s12 = sphi %s1315_s12, %s1565_s12  }
   0x7   : > { %p40_p0 = scmp.ne.s32.totalorder %s1276_s13, %s1272_s12  ;;  %p1547_p1 = scmp.eq.s32.totalorder %s1336_s16, 0 }
   0x8   : > { %p112_p3 = scmp.eq.s32.totalorder %s932_s17, 1  ;;  %p933_p5 = scmp.ge.s32.totalorder %s1284_s15, 1 }
   0x9   : > { %p1345_p4 = por %p1547_p1, %p40_p0  ;;  %p119_p7 = scmp.lt.s32.totalorder %s1284_s15, 3 }
   0xa   : > { %p1350_p6 = por %p112_p3, %p40_p0  ;;  %s1286_s21 = smov [#allocation6]  }
   0xb   : > { %s1551_s18 = scalar_select %p1345_p4, 1, 0 }
   0xc   : > { %s1552_s19 = scalar_select %p1350_p6, 1, 0 }
   0xd   : > { %p1355_p8 = pnand %p933_p5, %p119_p7  ;;  %s131_s22 = sshll.u32 %s1286_s21, 4  ;;  %s132_s22 = int_to_ptr.vmem [resolvable:$true] %s131_s22 }
   0xe   : > { %s1369_s24 = sadd.s32 1, %s1284_s15   ;;  %s27_s25 = sadd.s32 1, %s1280_s14 }
   0xf   : > { %s1553_s20 = scalar_select %p1355_p8, 1, 0 }
  0x10   : > { %p1081_p9 = pneg %p1355_p8  ;;  %s24_s26 = ssub.s32 %s1284_s15, %s1369_s24 }
  0x11   : > { %s1173_s27 = scalar_lea.vmem %s132_s22, 2560  ;;  %p1181_p5 = scmp.lt.s32.totalorder %s132_s22, %s132_s22 }
  0x12   : > { %p1364_p11 = pnand %p1081_p9, %p1547_p1  ;;  %p1174_p13 = scmp.ne.s32.totalorder %s132_s22, %s1173_s27 }
  0x13   : > { %p1182_p7 = scmp.lt.s32.totalorder %s1173_s27, %s1173_s27 }
  0x14   : > { %p1164_p12 = pneg %p1364_p11 }
  0x15   : > { %p1183_p10 = por %p1182_p7, %p1181_p5 }
  0x16   : > { %p1176_p0 = pnand %p1174_p13, %p1164_p12 }
  0x18   : > { %p1177_p3 = pneg %p1176_p0 }
  0x1a   : > { %p1184_p2 = pnand %p1183_p10, %p1177_p3 }
  0x1c   : > { %1187 = shalt.err (!%p1184_p2)
}
  0x1d   : > { %s1287_s28 = smov 64   ;;  %s1288_s29 = smov 4  }
  0x1e   : > { %1084 = dma.hbm_to_vmem [thread:$0]  (!%p1364_p11), %s1544_s1, 2560, %s132_s22, [#allocation7], %s1287_s28, %s1287_s28, %s1288_s29  }
  0x1f   : > { %p25_p2 = scmp.eq.s32.totalorder %s24_s26, 0  ;;  %p34_p9 = scmp.ne.s32.totalorder %s1280_s14, %s1276_s13 }
  0x20   : > { %p35_p10 = scmp.eq.s32.totalorder %s1284_s15, 0  ;;  %p1094_p12 = scmp.lt.s32.totalorder %s1284_s15, 2 }
  0x21   : > { %s1389_s5 = scalar_select %p25_p2, %s1280_s14, %s27_s25  }
  0x22   : > { %p36_p13 = por %p35_p10, %p34_p9  ;;  %p1555_p0 = scmp.eq.s32.totalorder %s1336_s16, 1 }
  0x23   : > { %s148_s7 = sand.u32 1, %s1280_s14   ;;  %s987_s8 = sshll.u32 %s1284_s15, 7 }
  0x24   : > { %p1393_p3 = por %p1555_p0, %p34_p9  ;;  %s936_s9 = sshll.u32 %s148_s7, 3 }
  0x25   : > { %s1402_s17 = scalar_lea.hbm %s1543_s0, %s987_s8  ;;  %s152_s21 = scalar_lea.vmem [#allocation3], %s936_s9 }
  0x26   : > { %s1556_s6 = scalar_select %p1393_p3, 1, 0 }
  0x27   : > { %s159_s22 = sshll.u32 %s152_s21, 4  ;;  %p1404_p11 = pnand %p1094_p12, %p36_p13  ;;  %s1408_s22 = int_to_ptr.vmem [resolvable:$true] %s159_s22 }
  0x28   : > { %s1410_s25 = scalar_lea.sflag [#allocation4], %s148_s7  ;;  %s1188_s26 = scalar_lea.hbm %s1402_s17, 128 }
  0x29   : > { %p1189_p5 = scmp.ne.s32.totalorder %s1402_s17, %s1188_s26  ;;  %p1190_p7 = pneg %p1404_p11 }
  0x2a   : > { %s1193_s4 = scalar_lea.hbm %s1543_s0, 256  ;;  %p1194_p10 = scmp.lt.s32.totalorder %s1402_s17, %s1543_s0 }
  0x2b   : > { %p1191_p2 = pnand %p1190_p7, %p1189_p5  ;;  %p1195_p12 = scmp.lt.s32.totalorder %s1193_s4, %s1188_s26 }
  0x2d   : > { %p1192_p9 = pneg %p1191_p2  ;;  %p1196_p13 = por %p1195_p12, %p1194_p10 }
  0x2f   : > { %p1197_p0 = pnand %p1196_p13, %p1192_p9 }
  0x31   : > { %1200 = shalt.err (!%p1197_p0)
}
  0x32   : > { %s1201_s7 = scalar_lea.vmem %s1408_s22, 128  ;;  %s1289_s10 = smov [#allocation3]  }
  0x33   : > { %p1202_p1 = scmp.ne.s32.totalorder %s1408_s22, %s1201_s7  ;;  %s1206_s11 = sshll.u32 %s1289_s10, 4  ;;  %s1207_s11 = int_to_ptr.vmem [resolvable:$false] %s1206_s11 }
  0x34   : > { %s1208_s21 = scalar_lea.vmem %s1207_s11, 256  ;;  %p1209_p2 = scmp.lt.s32.totalorder %s1408_s22, %s1207_s11 }
  0x35   : > { %p1204_p6 = pnand %p1202_p1, %p1190_p7  ;;  %p1210_p3 = scmp.lt.s32.totalorder %s1208_s21, %s1201_s7 }
  0x37   : > { %p1205_p5 = pneg %p1204_p6  ;;  %p1211_p4 = por %p1210_p3, %p1209_p2 }
  0x39   : > { %p1212_p8 = pnand %p1211_p4, %p1205_p5 }
  0x3b   : > { %1215 = shalt.err (!%p1212_p8)
}
  0x3c   : > { %1088 = dma.hbm_to_vmem [thread:$0]  (!%p1404_p11), %s1402_s17, 128, %s1408_s22, %s1410_s25, %s1287_s28, %s1287_s28, %s1288_s29  }
  0x3d   : > { %p1558_p1 = scmp.ne.s32.totalorder %s1553_s20, 0 }
  0x3e   : > { %s1437_s26 = sand.u32 (!%p1558_p1), 1, %s1276_s13   ;;  %p1559_p4 = scmp.ne.s32.totalorder (!%p1558_p1), %s1551_s18, 0 }
  0x3f   : > { %171 = sbr.rel (%p1558_p1) target bundleno = 351 (0x15f), region = 32  ;;  %s940_s27 = sshll.u32 (!%p1558_p1), %s1437_s26, 3 }
  0x40   : > { %s174_s30 = scalar_lea.sflag (!%p1558_p1), [#allocation4], %s1437_s26  ;;  %s177_s23 = scalar_lea.vmem (!%p1558_p1), [#allocation3], %s940_s27 }
  0x44   : > { %1259 = dma.done.wait (%p1559_p4), %s174_s30, 128  }
  0x45   : > { %1261 = vsyncadd (%p1559_p4), %s174_s30, 4294967168  ;;  %p1560_p6 = scmp.eq.s32.totalorder %s1336_s16, 0 }
  0x47   : > { %1263 = dma.done.wait (%p1560_p6), [#allocation7], 2560   ;;  %p1561_p8 = pmov %p1560_p6 }
  0x48   : > { %vm205_vm0 = vcmask 516096   ;;  %v1290_v0 = vmov 0.0   ;;  %v1291_v1 = vmov 0   ;;  %vm1292_vm1 = vmmov 0   ;;  %v1136_v2 = vld [vmem:[#allocation6 + $0x18] sm:$0xff]   ;;  %v1137_v3 = vld [vmem:[#allocation6 + $0x10] sm:$0xff]  }
  0x49   : > { %1265 = vsyncadd (%p1561_p8), [#allocation7], 4294964736  ;;  %1013 = vmatprep.subr.bf16.mxu0 %v1290_v0  ;;  %1025 = vmatprep.subr.bf16.mxu1 %v1290_v0  ;;  %206 = vst.msk [vmem:[#allocation2] sm:$0x1] %vm205_vm0, %v1291_v1  ;;  %v1138_v4 = vld [vmem:[#allocation6 + $0x38] sm:$0xff]   ;;  %v1140_v5 = vld [vmem:[#allocation6 + $0x30] sm:$0xff]  }
  0x4a   : > { %1021 = vmatprep.mubr.msk.bf16.mxu0 %vm1292_vm1, %v1290_v0  ;;  %1033 = vmatprep.mubr.msk.bf16.mxu1 %vm1292_vm1, %v1290_v0  ;;  %vm213_vm2 = vcmask 1040384   ;;  %vm214_vm3 = vcmask 1044484   ;;  %v1139_v6 = vld [vmem:[#allocation6 + $0x8] sm:$0xff]   ;;  %vm224_vm4 = vcmask 519169   ;;  %v209_v7 = vld [vmem:[%s177_s23] sm:$0xf] }
  0x4b   : > { %1014 = vmatpush3.bf16.msra.mxu0 %v1136_v2  ;;  %1026 = vmatpush3.bf16.msra.mxu1 %v1138_v4  ;;  %v210_v8 = vld [vmem:[%s177_s23 + $0x4] sm:$0xf]  ;;  %v1142_v9 = vld [vmem:[#allocation6 + $0x28] sm:$0xff]   ;;  %vm215_vm5 = vmor %vm213_vm2, %vm214_vm3  ;;  %v216_v10 = vrot.slane %v209_v7, 7  ;;  %vm226_vm6 = vcmask 519168   ;;  %vm275_vm7 = vcmask 523264  }
  0x4c   : > { %1015 = vmatprep.subr.bf16.mxu0 %v1290_v0  ;;  %1027 = vmatprep.subr.bf16.mxu1 %v1290_v0  ;;  %v218_v11 = vrot.slane %v210_v8, 7  ;;  %v1141_v12 = vld [vmem:[#allocation6] sm:$0xff]   ;;  %v1145_v18 = vld [vmem:[#allocation6 + $0x58] sm:$0xff]   ;;  %v1148_v24 = vld [vmem:[#allocation6 + $0x50] sm:$0xff]   ;;  %vm342_vm8 = vsmask.f32 7424 }
  0x4d   : > { %v217_v13 = vrot.slane %v216_v10, 4  ;;  %225 = vst.msk [vmem:[#allocation2] sm:$0xe] %vm224_vm4, %v216_v10  ;;  %v1144_v16 = vld [vmem:[#allocation6 + $0x20] sm:$0xff]   ;;  %v1149_v32 = vld [vmem:[#allocation6 + $0x78] sm:$0xff]   ;;  %v1150_v33 = vld [vmem:[#allocation6 + $0x48] sm:$0xff]  }
  0x4e   : > { %v220_v14 = vrot.slane %v218_v11, 4  ;;  %vm438_vm9 = vcmask 1046528   ;;  %v1151_v38 = vld [vmem:[#allocation6 + $0x70] sm:$0xff]   ;;  %v1152_v39 = vld [vmem:[#allocation6 + $0x40] sm:$0xff]   ;;  %v1153_v45 = vld [vmem:[#allocation6 + $0x68] sm:$0xff]   ;;  %vm626_vm11 = vcmask 1045504  }
  0x4f   : > { %1016 = vmatpush3.bf16.msra.mxu0 %v1137_v3  ;;  %1028 = vmatpush3.bf16.msra.mxu1 %v1140_v5  ;;  %v219_v15 = vsel %vm215_vm5, %v217_v13, %v218_v11  ;;  %v1156_v46 = vld [vmem:[#allocation6 + $0x98] sm:$0xff]   ;;  %v1155_v51 = vld [vmem:[#allocation6 + $0x60] sm:$0xff]   ;;  %v1158_v54 = vld [vmem:[#allocation6 + $0x90] sm:$0xff]   ;;  %vm525_vm10 = vsmask.f32 6400  ;;  %vm822_vm14 = vcmask 1041409  }
  0x50   : > { %1017 = vmatprep.subr.bf16.mxu0 %v1290_v0  ;;  %1029 = vmatprep.subr.bf16.mxu1 %v1290_v0  ;;  %228 = vst.msk [vmem:[#allocation2 + $0x8] sm:$0x1] %vm205_vm0, %v220_v14  ;;  %v1159_v57 = vld [vmem:[#allocation6 + $0x88] sm:$0xff]   ;;  %v1160_v59 = vld [vmem:[#allocation6 + $0x80] sm:$0xff]   ;;  %vm824_vm15 = vcmask 1042434   ;;  %vm826_vm0 = vcmask 1043459  }
  0x51   : > { %227 = vst.msk [vmem:[#allocation2 + $0x4] sm:$0xf] %vm226_vm6, %v219_v15  ;;  %v1293_v15 = vmov 1983009808   ;;  %vm832_vm2 = vcmask 1046534   ;;  %s984_s28 = sshll.u32 %s1336_s16, 7 }
  0x52   : > { %s203_s29 = scalar_lea.vmem [#allocation8], %s940_s27  ;;  %vm834_vm4 = vcmask 1047559   ;;  %s1506_s4 = scalar_lea.hbm %s1546_s3, %s984_s28 }
  0x53   : > { %1018 = vmatpush3.bf16.msra.mxu0 %v1139_v6  ;;  %1030 = vmatpush3.bf16.msra.mxu1 %v1142_v9  ;;  %s852_s17 = sshll.u32 %s203_s29, 4  ;;  %s839_s8 = scalar_lea.sflag [#allocation5], %s1437_s26  ;;  %s853_s17 = int_to_ptr.vmem [resolvable:$true] %s852_s17 }
  0x54   : > { %1019 = vmatprep.subr.bf16.mxu0 %v1290_v0  ;;  %1031 = vmatprep.subr.bf16.mxu1 %v1290_v0  ;;  %v322_v17 = vld [vmem:[#allocation2] sm:$0xf]  ;;  %s1216_s9 = scalar_lea.vmem %s853_s17, 128  ;;  %p1562_p11 = scmp.ne.s32.totalorder %s1556_s6, 0 }
  0x55   : > { %v425_v27 = vld [vmem:[#allocation2] sm:$0xe]  ;;  %p1217_p3 = scmp.ne.s32.totalorder %s853_s17, %s1216_s9  ;;  %s1294_s16 = smov [#allocation8]  }
  0x56   : > { %v613_v55 = vld [vmem:[#allocation2] sm:$0xc]  ;;  %s1220_s7 = sshll.u32 %s1294_s16, 4  ;;  %s1221_s7 = int_to_ptr.vmem [resolvable:$false] %s1220_s7 }
  0x57   : > { %1020 = vmatpush3.bf16.msra.mxu0 %v1141_v12  ;;  %1032 = vmatpush3.bf16.msra.mxu1 %v1144_v16  ;;  %v1147_v19 = vld [vmem:[#allocation2 + $0x8] ss:$0 sps:$4 sm:$0x11]   ;;  %v710_v16 = vunpack.c.l.s4 %v1293_v15  ;;  %p1218_p7 = pnand %p1217_p3, %p1562_p11  ;;  %s1222_s10 = scalar_lea.vmem %s1221_s7, 256 }
  0x58   : > { %1037 = vmatprep.subr.bf16.mxu0 %v1290_v0  ;;  %1049 = vmatprep.subr.bf16.mxu1 %v1290_v0  ;;  %v1143_v20 = vld [vmem:[#allocation2] sm:$0xff]   ;;  %v351_v23 = vshll.u32 %v1147_v19, 16  ;;  %v1157_v34 = vld [vmem:[#allocation2 + $0x8] ss:$0 sps:$4 sm:$0x33]   ;;  %v440_v37 = vrot.slane %v1147_v19, 1  ;;  %p1223_p10 = scmp.lt.s32.totalorder %s853_s17, %s1221_s7  ;;  %p1224_p12 = scmp.lt.s32.totalorder %s1222_s10, %s1216_s9 }
  0x59   : > { %v1468_v21 = vld [vmem:[#allocation2 + $0x4] sm:$0xf]  ;;  %v535_v42 = vshrl.u32 %v1157_v34, 16  ;;  %v538_v43 = vshll.u32 %v1157_v34, 16  ;;  %v628_v61 = vrot.slane %v1157_v34, 2  ;;  %p1219_p9 = pneg %p1218_p7 }
  0x5a   : > { %v950_v22 = vcombine.low %v322_v17, %v1468_v21  ;;  %1022 = vmatmul.mubr.msk.bf16.vlgmr.msra.gmra.mxu0 %vm275_vm7, %v1143_v20  ;;  %v353_v29 = vrot.slane %v351_v23, 1  ;;  %v957_v30 = vcombine.low %v425_v27, %v1468_v21  ;;  %v969_v58 = vcombine.low %v613_v55, %v1468_v21  ;;  %p1225_p13 = por %p1224_p12, %p1223_p10 }
  0x5b   : > { %1038 = vmatpush3.bf16.msra.mxu0 %v1145_v18  ;;  %1045 = vmatprep.mubr.msk.bf16.mxu0 %vm1292_vm1, %v1290_v0  ;;  %v537_v49 = vrot.slane %v535_v42, 1  ;;  %v540_v50 = vrot.slane %v538_v43, 2  ;;  %v712_v17 = vlaneseq  ;;  %v711_v23 = vunpack.c.0.s8 %v710_v16 }
  0x5c   : > { %v344_v25 = vshrl.u32 %v950_v22, 16  ;;  %v346_v26 = vshll.u32 %v950_v22, 16  ;;  %1039 = vmatprep.subr.bf16.mxu0 %v1290_v0  ;;  %v439_v36 = vrot.slane %v957_v30, 1  ;;  %v527_v40 = vshrl.u32 %v957_v30, 16  ;;  %p1226_p0 = pnand %p1225_p13, %p1219_p9 }
  0x5d   : > { %v530_v41 = vshll.u32 %v957_v30, 16  ;;  %v541_v53 = vor.u32 %v540_v50, %v537_v49  ;;  %v627_v60 = vrot.slane %v969_v58, 2 }
  0x5e   : > { %v348_v28 = vrot.slane %v346_v26, 1  ;;  %v441_v44 = vsel %vm438_vm9, %v439_v36, %v440_v37  ;;  %v529_v47 = vrot.slane %v527_v40, 1 }
  0x5f   : > { %1040 = vmatpush3.bf16.msra.mxu0 %v1148_v24  ;;  %v532_v48 = vrot.slane %v530_v41, 2  ;;  %v629_v62 = vsel %vm626_vm11, %v627_v60, %v628_v61  ;;  %v713_v24 = vshrl.u32 %v712_v17, 7 }
  0x60   : > { %v349_v31 = vor.u32 %v348_v28, %v344_v25  ;;  %1041 = vmatprep.subr.bf16.mxu0 %v1290_v0 }
  0x61   : > { %v533_v52 = vor.u32 %v532_v48, %v529_v47  ;;  %v714_v30 = vsub.s32 %v711_v23, %v713_v24 }
  0x62   : > { %v354_v35 = vsel %vm342_vm8, %v349_v31, %v353_v29 }
  0x63   : > { %1034 = vmatmul.mubr.msk.bf16.vlgmr.msra.gmra.mxu1 %vm275_vm7, %v354_v35  ;;  %1042 = vmatpush3.bf16.msra.mxu0 %v1150_v33  ;;  %v542_v56 = vsel %vm525_vm10, %v533_v52, %v541_v53 }
  0x64   : > { %1050 = vmatpush3.bf16.msra.mxu1 %v1149_v32  ;;  %1043 = vmatprep.subr.bf16.mxu0 %v1290_v0 }
  0x65   : > { %1051 = vmatprep.subr.bf16.mxu1 %v1290_v0  ;;  %1057 = vmatprep.mubr.msk.bf16.mxu1 %vm1292_vm1, %v1290_v0 }
  0x67   : > { %1044 = vmatpush3.bf16.msra.mxu0 %v1152_v39 }
  0x68   : > { %1052 = vmatpush3.bf16.msra.mxu1 %v1151_v38  ;;  %1061 = vmatprep.subr.bf16.mxu0 %v1290_v0 }
  0x69   : > { %1053 = vmatprep.subr.bf16.mxu1 %v1290_v0 }
  0x6a   : > { %1046 = vmatmul.mubr.msk.bf16.vlgmr.msra.gmra.mxu0 %vm275_vm7, %v441_v44  ;;  %v792_v44 = vsub.s32 0, %v713_v24 }
  0x6b   : > { %1062 = vmatpush3.bf16.msra.mxu0 %v1156_v46  ;;  %1069 = vmatprep.mubr.msk.bf16.mxu0 %vm1292_vm1, %v1290_v0  ;;  %vm830_vm1 = vcmask 1045509  }
  0x6c   : > { %1054 = vmatpush3.bf16.msra.mxu1 %v1153_v45  ;;  %1063 = vmatprep.subr.bf16.mxu0 %v1290_v0 }
  0x6d   : > { %1055 = vmatprep.subr.bf16.mxu1 %v1290_v0 }
  0x6f   : > { %1064 = vmatpush3.bf16.msra.mxu0 %v1158_v54 }
  0x70   : > { %1056 = vmatpush3.bf16.msra.mxu1 %v1155_v51  ;;  %1065 = vmatprep.subr.bf16.mxu0 %v1290_v0 }
  0x73   : > { %1058 = vmatmul.mubr.msk.bf16.vlgmr.msra.gmra.mxu1 %vm275_vm7, %v542_v56  ;;  %1066 = vmatpush3.bf16.msra.mxu0 %v1159_v57 }
  0x74   : > { %1067 = vmatprep.subr.bf16.mxu0 %v1290_v0  ;;  %v943_v0 = vld [vmem:[%s1545_s2] ss:$0 sm:$0xff] }
  0x77   : > { %1068 = vmatpush3.bf16.msra.mxu0 %v1160_v59 }
  0x7a   : > { %1070 = vmatmul.mubr.msk.bf16.vlgmr.msra.gmra.mxu0 %vm275_vm7, %v629_v62 }
 0x11a   : > { %v313_v63 = vpop.f32.mrf.mxu0 }
 0x11b   : > { %v320_v13 = vadd.f32 %v943_v0, %v313_v63 }
 0x11c   : > { %v1023_v1 = vpop.f32.mrf.mxu0 }
 0x11e   : > { %v316_v2 = vpop.f32.mrf.mxu0 }
 0x11f   : > { %v321_v20 = vadd.f32 %v943_v0, %v316_v2 }
 0x120   : > { %v1024_v3 = vpop.f32.mrf.mxu0 }
 0x123   : > { %v416_v4 = vpop.f32.mrf.mxu1 }
 0x124   : > { %v423_v18 = vadd.f32 %v416_v4, %v320_v13 }
 0x125   : > { %v1035_v5 = vpop.f32.mrf.mxu1 }
 0x127   : > { %v419_v6 = vpop.f32.mrf.mxu1 }
 0x128   : > { %v424_v25 = vadd.f32 %v419_v6, %v321_v20 }
 0x129   : > { %v1036_v7 = vpop.f32.mrf.mxu1 }
 0x12a   : > { %v503_v8 = vpop.f32.mrf.mxu0 }
 0x12b   : > { %v510_v21 = vadd.f32 %v503_v8, %v423_v18 }
 0x12c   : > { %v1047_v9 = vpop.f32.mrf.mxu0 }
 0x12e   : > { %v506_v10 = vpop.f32.mrf.mxu0 }
 0x12f   : > { %v511_v28 = vadd.f32 %v506_v10, %v424_v25 }
 0x130   : > { %v1048_v11 = vpop.f32.mrf.mxu0 }
 0x133   : > { %v604_v12 = vpop.f32.mrf.mxu1 }
 0x134   : > { %v611_v26 = vadd.f32 %v604_v12, %v510_v21 }
 0x135   : > { %v1059_v14 = vpop.f32.mrf.mxu1 }
 0x137   : > { %v607_v19 = vpop.f32.mrf.mxu1 }
 0x138   : > { %v612_v32 = vadd.f32 %v607_v19, %v511_v28 }
 0x139   : > { %v1060_v22 = vpop.f32.mrf.mxu1 }
 0x13a   : > { %v691_v27 = vpop.f32.mrf.mxu0 }
 0x13b   : > { %v698_v29 = vadd.f32 %v691_v27, %v611_v26 }
 0x13c   : > { %v1071_v31 = vpop.f32.mrf.mxu0 }
 0x13d   : > { %vm700_vm12 = vcmp.ge.f32.partialorder %v698_v29, 0.0  ;;  %v702_v33 = vmul.f32 0.01, %v698_v29 }
 0x13e   : > { %v694_v34 = vpop.f32.mrf.mxu0 }
 0x13f   : > { %v704_v35 = vsel %vm700_vm12, %v698_v29, %v702_v33  ;;  %v699_v36 = vadd.f32 %v694_v34, %v612_v32 }
 0x140   : > { %v708_v37 = vcombine.high %v704_v35, %v704_v35  ;;  %v715_v38 = vrot.slane %v704_v35, %v714_v30  ;;  %v1072_v39 = vpop.f32.mrf.mxu0 }
 0x141   : > { %vm701_vm13 = vcmp.ge.f32.partialorder %v699_v36, 0.0  ;;  %v703_v40 = vmul.f32 0.01, %v699_v36 }
 0x142   : > { %v722_v41 = vrot.slane %v708_v37, %v714_v30  ;;  %v723_v42 = vcombine.high %v715_v38, %v715_v38  ;;  %v975_v43 = vrot.slane %v715_v38, 9 }
 0x143   : > { %v705_v45 = vsel %vm701_vm13, %v699_v36, %v703_v40 }
 0x144   : > { %v724_v46 = vcombine.high %v722_v41, %v722_v41  ;;  %v976_v47 = vrot.slane %v723_v42, 9  ;;  %v977_v48 = vrot.slane %v722_v41, 9  ;;  %v774_v49 = vmax.f32 %v715_v38, %v975_v43 }
 0x145   : > { %v725_v50 = vcombine.high %v705_v45, %v705_v45  ;;  %v732_v51 = vrot.slane %v705_v45, %v714_v30 }
 0x146   : > { %v978_v52 = vrot.slane %v724_v46, 9  ;;  %v775_v53 = vmax.f32 %v723_v42, %v976_v47  ;;  %v776_v54 = vmax.f32 %v722_v41, %v977_v48  ;;  %v793_v59 = vrot.slane %v774_v49, %v792_v44 }
 0x147   : > { %v739_v55 = vrot.slane %v725_v50, %v714_v30  ;;  %v740_v56 = vcombine.high %v732_v51, %v732_v51  ;;  %v979_v57 = vrot.slane %v732_v51, 9 }
 0x148   : > { %v777_v58 = vmax.f32 %v724_v46, %v978_v52  ;;  %v797_v60 = vrot.slane %v775_v53, %v792_v44  ;;  %v801_v61 = vrot.slane %v776_v54, %v792_v44 }
 0x149   : > { %v741_v62 = vcombine.high %v739_v55, %v739_v55  ;;  %v980_v63 = vrot.slane %v740_v56, 9  ;;  %v981_v1 = vrot.slane %v739_v55, 9  ;;  %v778_v2 = vmax.f32 %v732_v51, %v979_v57 }
 0x14a   : > { %v805_v3 = vrot.slane %v777_v58, %v792_v44  ;;  %v823_v4 = vsel %vm822_vm14, %v797_v60, %v793_v59 }
 0x14b   : > { %v825_v5 = vsel %vm824_vm15, %v801_v61, %v823_v4  ;;  %v982_v6 = vrot.slane %v741_v62, 9  ;;  %v779_v7 = vmax.f32 %v740_v56, %v980_v63  ;;  %v780_v8 = vmax.f32 %v739_v55, %v981_v1 }
 0x14c   : > { %v809_v9 = vrot.slane %v778_v2, %v792_v44  ;;  %v827_v10 = vsel %vm826_vm0, %v805_v3, %v825_v5 }
 0x14d   : > { %v813_v0 = vrot.slane %v779_v7, %v792_v44  ;;  %v817_v11 = vrot.slane %v780_v8, %v792_v44  ;;  %v781_v12 = vmax.f32 %v741_v62, %v982_v6 }
 0x14e   : > { %v829_v13 = vsel %vm214_vm3, %v809_v9, %v827_v10 }
 0x14f   : > { %v821_v14 = vrot.slane %v781_v12, %v792_v44  ;;  %v831_v15 = vsel %vm830_vm1, %v813_v0, %v829_v13 }
 0x150   : > { %v833_v16 = vsel %vm832_vm2, %v817_v11, %v831_v15 }
 0x151   : > { %v835_v17 = vsel %vm834_vm4, %v821_v14, %v833_v16 }
 0x152   : > { %837 = vst [vmem:[%s203_s29] sm:$0xff] %v835_v17 }
 0x153   : > { %1229 = shalt.err (!%p1226_p0)
}
 0x154   : > { %s1230_s11 = scalar_lea.hbm %s1506_s4, 128  ;;  %s1234_s27 = scalar_lea.hbm %s1546_s3, 256 }
 0x155   : > { %p1231_p5 = scmp.ne.s32.totalorder %s1506_s4, %s1230_s11  ;;  %p1235_p4 = scmp.lt.s32.totalorder %s1506_s4, %s1546_s3 }
 0x156   : > { %p1236_p6 = scmp.lt.s32.totalorder %s1234_s27, %s1230_s11 }
 0x157   : > { %p1232_p2 = pnand %p1231_p5, %p1562_p11 }
 0x158   : > { %p1237_p8 = por %p1236_p6, %p1235_p4 }
 0x159   : > { %p1233_p1 = pneg %p1232_p2 }
 0x15b   : > { %p1238_p3 = pnand %p1237_p8, %p1233_p1 }
 0x15d   : > { %1241 = shalt.err (!%p1238_p3)
}
 0x15e   : > { %1079 = dma.vmem_to_hbm [thread:$0]  (%p1562_p11), %s853_s17, 128, %s1506_s4, %s839_s8  }
 0x15f PF: > { %s864_s18 = sand.u32 1, %s1272_s12   ;;  %p1563_p7 = scmp.ne.s32.totalorder %s1552_s19, 0 }
 0x160   : > { %p1564_p9 = scmp.ge.s32.totalorder %s1284_s15, 2  ;;  %s865_s20 = scalar_lea.sflag [#allocation5], %s864_s18 }
 0x162   : > { %p1090_p10 = pnand %p1564_p9, %p1563_p7 }
 0x164   : > { %p1091_p12 = pneg %p1090_p10 }
 0x166   : > { %1267 = dma.done.wait (%p1091_p12), %s865_s20, 128  }
 0x167   : > { %1269 = vsyncadd (%p1091_p12), %s865_s20, 4294967168  ;;  %p17_p13 = scmp.ge.s32.totalorder %s1369_s24, 4   ;;  %s1565_s12 = smov %s1276_s13 }
 0x168   : > { %s1566_s13 = smov %s1280_s14  ;;  %s1567_s14 = smov %s1389_s5 }
 0x169   : > { %s1568_s15 = smov %s1369_s24  ;;  %19 = sbr.rel (!%p17_p13) target bundleno = 6 (0x6), region = 85 }
 0x16e   :  { %870 = vsyncpa [#allocation4], 1 }
 0x16f   :  { %872 = vsyncpa [#allocation4 + $0x1], 1 }
 0x170   :  { %873 = vsyncpa [#allocation7], 1 }
 0x171   :  { %874 = vsyncpa [#allocation5], 1 }
 0x172   :  { %876 = vsyncpa [#allocation5 + $0x1], 1 }

</bundles_post_ra>
